<compile_context>
chip_gen: v7x
topology: tpu7x:2x2x1
jax: 0.10.0
libtpu: 0.0.40
codegen_flags: <defaults>
</compile_context>

<pallas_src>
import jax
import jax.numpy as jnp
from jax.experimental import pallas as pl
from jax.experimental.pallas import tpu as pltpu

HIDDEN = 64       # PyTorch module: hidden_size_1 = hidden_size_2 = 64
LANE = 128
SUBLANE = 8


def _round_up(x, m):
    return ((x + m - 1) // m) * m


def discriminator_kernel(x_ref, w1_ref, b1_ref, w2_ref, b2_ref, w3_ref, b3_ref, o_ref):
    """Fused 3-layer MLP on one batch tile: sigmoid(relu(relu(x@W1+b1)@W2+b2)@W3+b3)."""
    cdt = w1_ref.dtype  # MXU input dtype (bf16 or f32); accumulation is always f32.

    x = x_ref[...]
    h1 = jnp.dot(x, w1_ref[...], preferred_element_type=jnp.float32) + b1_ref[...]
    h1 = jnp.maximum(h1, 0.0).astype(cdt)          # ReLU in f32 (VPU), cast for MXU

    h2 = jnp.dot(h1, w2_ref[...], preferred_element_type=jnp.float32) + b2_ref[...]
    h2 = jnp.maximum(h2, 0.0).astype(cdt)

    # Final layer keeps its true (narrow) output width -> sigmoid/EUP only on
    # real logits; the narrow store costs a handful of masked vst per tile.
    logits = jnp.dot(h2, w3_ref[...], preferred_element_type=jnp.float32) + b3_ref[...]
    o_ref[...] = jax.nn.sigmoid(logits).astype(o_ref.dtype)


def _prepare_params(params, n_feature, n_output, compute_dtype):
    """Zero-pad the hidden width to one 128-lane vreg; keep n_output unpadded."""
    h_pad = _round_up(HIDDEN, LANE)

    def pad2(a, rows, cols):
        return jnp.pad(a, ((0, rows - a.shape[0]), (0, cols - a.shape[1])))

    w1 = pad2(params["w1"], n_feature, h_pad).astype(compute_dtype)
    w2 = pad2(params["w2"], h_pad, h_pad).astype(compute_dtype)
    w3 = pad2(params["w3"], h_pad, n_output).astype(compute_dtype)
    # Biases stay f32 so bias-add / ReLU / sigmoid run in f32 on every generation.
    b1 = pad2(params["b1"].reshape(1, -1), 1, h_pad).astype(jnp.float32)
    b2 = pad2(params["b2"].reshape(1, -1), 1, h_pad).astype(jnp.float32)
    b3 = params["b3"].reshape(1, -1).astype(jnp.float32)
    return (w1, b1, w2, b2, w3, b3), h_pad


def _default_vmem_limit_bytes():
    """Generation-aware scoped-VMEM limit: v5e/v6e have 128 MiB/core, v7x 64 MiB."""
    try:
        cap = pltpu.get_tpu_info().vmem_capacity_bytes
    except Exception:
        cap = 64 * 1024 * 1024                    # conservative (v7x) fallback
    # Leave headroom for the compiler's own scratch; cap well below physical.
    return max(32 * 1024 * 1024, min(cap - 16 * 1024 * 1024, 96 * 1024 * 1024))


def discriminator_forward(x, params, *, compute_dtype=jnp.bfloat16, block_b=None,
                          vmem_limit_bytes=None):
    """x: (B, n_feature). params: dict of w1,b1,w2,b2,w3,b3 (f32, (in,out) layout)."""
    B, n_feature = x.shape
    n_output = params["w3"].shape[1]

    (w1, b1, w2, b2, w3, b3), h_pad = _prepare_params(
        params, n_feature, n_output, compute_dtype)
    x = x.astype(compute_dtype)

    in_bytes = jnp.dtype(compute_dtype).itemsize
    if vmem_limit_bytes is None:
        vmem_limit_bytes = _default_vmem_limit_bytes()

    # ---- batch tile selection -------------------------------------------------
    # Honest VMEM model: double-buffered resident weights/biases, double-buffered
    # x and output tiles, plus per-row f32 intermediates (h1/h2/logits) and their
    # compute-dtype casts feeding the next matmul.
    resident_bytes = 2 * ((w1.size + w2.size + w3.size) * in_bytes
                          + (b1.size + b2.size + b3.size) * 4)
    per_row_bytes = (2 * n_feature * in_bytes          # x, double-buffered
                     + 2 * n_output * 4                # out, double-buffered
                     + 3 * h_pad * 4                   # f32 h1 / h2 (+logits slack)
                     + 2 * h_pad * in_bytes)           # casts for the next matmul
    budget = vmem_limit_bytes - resident_bytes - (4 << 20)   # compiler-scratch headroom
    max_rows = max(SUBLANE, budget // per_row_bytes)

    if block_b is None:
        block_b = 4096          # big tiles amortize the ~0.35 us per-grid-step overhead
    block_b = min(block_b, max_rows)

    if block_b >= B:
        # Keep >= 2 parallel grid steps on non-trivial batches so v7x's two
        # TensorCores both get work; tiny batches collapse to a single step.
        if B >= 256:
            block_b = max(SUBLANE, _round_up(-(-B // 2), SUBLANE))
        else:
            block_b = B                               # block == full array dim is legal
    else:
        block_b = max(SUBLANE, (block_b // SUBLANE) * SUBLANE)

    num_steps = pl.cdiv(B, block_b)
    grid = (num_steps,)

    const = lambda i: (0, 0)  # weights/biases: same (tiny, resident) block every step
    in_specs = [
        pl.BlockSpec((block_b, n_feature), lambda i: (i, 0)),   # x (default 2-deep pipeline)
        pl.BlockSpec((n_feature, h_pad), const),                # w1
        pl.BlockSpec((1, h_pad), const),                        # b1
        pl.BlockSpec((h_pad, h_pad), const),                    # w2
        pl.BlockSpec((1, h_pad), const),                        # b2
        pl.BlockSpec((h_pad, n_output), const),                 # w3 (narrow output)
        pl.BlockSpec((1, n_output), const),                     # b3
    ]
    out_spec = pl.BlockSpec((block_b, n_output), lambda i: (i, 0))

    flops = 2 * B * (n_feature * h_pad + h_pad * h_pad + h_pad * n_output)
    weight_hbm_bytes = ((w1.size + w2.size + w3.size) * in_bytes
                        + (b1.size + b2.size + b3.size) * 4)
    cost = pl.CostEstimate(
        flops=flops,
        transcendentals=B * n_output,
        bytes_accessed=B * n_feature * in_bytes + B * n_output * 4 + weight_hbm_bytes,
    )

    return pl.pallas_call(
        discriminator_kernel,
        out_shape=jax.ShapeDtypeStruct((B, n_output), jnp.float32),
        grid_spec=pltpu.PrefetchScalarGridSpec(
            num_scalar_prefetch=0,
            grid=grid,
            in_specs=in_specs,
            out_specs=out_spec,
        ),
        compiler_params=pltpu.CompilerParams(
            dimension_semantics=("parallel",),
            vmem_limit_bytes=vmem_limit_bytes,
        ),
        cost_estimate=cost,
    )(x, w1, b1, w2, b2, w3, b3)


def init_params(key, n_feature, n_output):
    """Deterministic synthetic init (uniform, roughly matching nn.Linear's scale)."""
    k1, k2, k3, k4, k5, k6 = jax.random.split(key, 6)

    def lin(kw, kb, fan_in, fan_out):
        bound = 1.0 / jnp.sqrt(fan_in)
        w = jax.random.uniform(kw, (fan_in, fan_out), jnp.float32, -bound, bound)
        b = jax.random.uniform(kb, (1, fan_out), jnp.float32, -bound, bound)
        return w, b

    w1, b1 = lin(k1, k2, n_feature, HIDDEN)
    w2, b2 = lin(k3, k4, HIDDEN, HIDDEN)
    w3, b3 = lin(k5, k6, HIDDEN, n_output)
    return dict(w1=w1, b1=b1, w2=w2, b2=b2, w3=w3, b3=b3)


def reference_forward(x, p, compute_dtype=jnp.float32):
    """Pure-JAX reference emulating the kernel's precision policy."""
    cdt = compute_dtype

    def layer(h, w, b):
        return jnp.dot(h.astype(cdt), w.astype(cdt),
                       preferred_element_type=jnp.float32) + b.astype(jnp.float32)

    h1 = jax.nn.relu(layer(x, p["w1"], p["b1"]))
    h2 = jax.nn.relu(layer(h1, p["w2"], p["b2"]))
    return jax.nn.sigmoid(layer(h2, p["w3"], p["b3"]))


if __name__ == "__main__":
    key = jax.random.PRNGKey(0)
    kx, kx2, kp = jax.random.split(key, 3)

    n_feature, n_output = 32, 1
    params = init_params(kp, n_feature, n_output)

    # 1) Small batch, f32 compute: tight correctness check vs the JAX reference.
    batch = 8
    x = jax.random.normal(kx, (batch, n_feature), jnp.float32)
    out = jax.block_until_ready(
        discriminator_forward(x, params, compute_dtype=jnp.float32))
    ref = reference_forward(x, params, compute_dtype=jnp.float32)
    assert out.shape == (batch, n_output)
    assert jnp.allclose(out, ref, atol=1e-5, rtol=1e-5), "f32 mismatch vs JAX reference"

    # 2) Default path (bf16 streams, f32 accumulation) on a multi-step grid:
    #    B=512 -> two parallel 256-row tiles (megacore-shardable on v7x),
    #    narrow lane output, no post-kernel slice.
    batch2 = 512
    x2 = jax.random.normal(kx2, (batch2, n_feature), jnp.float32)
    out2 = jax.block_until_ready(discriminator_forward(x2, params))
    ref2 = reference_forward(x2, params, compute_dtype=jnp.bfloat16)
    assert out2.shape == (batch2, n_output)
    assert jnp.allclose(out2, ref2, atol=1e-2), "bf16 mismatch vs JAX reference"

    print("KERNEL_OK")
</pallas_src>

<mosaic_0001>
module attributes {stable_mosaic.version = 11 : i64} {
  func.func @discriminator_kernel(%arg0: i32, %arg1: memref<8x32xf32, #tpu.memory_space<vmem>>, %arg2: memref<32x128xf32, #tpu.memory_space<vmem>>, %arg3: memref<1x128xf32, #tpu.memory_space<vmem>>, %arg4: memref<128x128xf32, #tpu.memory_space<vmem>>, %arg5: memref<1x128xf32, #tpu.memory_space<vmem>>, %arg6: memref<128x1xf32, #tpu.memory_space<vmem>>, %arg7: memref<1x1xf32, #tpu.memory_space<vmem>>, %arg8: memref<8x1xf32, #tpu.memory_space<vmem>>) attributes {dimension_semantics = [#tpu.dimension_semantics<parallel>], iteration_bounds = array<i64: 1>, scalar_prefetch = 0 : i64, scratch_operands = 0 : i64, tpu.core_type = #tpu.core_type<tc>, window_params = [{transform_indices = @transform_0, window_bounds = array<i64: 8, 32>}, {pipeline_mode = #tpu.pipeline_mode<synchronous>, transform_indices = @transform_1, window_bounds = array<i64: 32, 128>}, {pipeline_mode = #tpu.pipeline_mode<synchronous>, transform_indices = @transform_2, window_bounds = array<i64: 1, 128>}, {pipeline_mode = #tpu.pipeline_mode<synchronous>, transform_indices = @transform_3, window_bounds = array<i64: 128, 128>}, {pipeline_mode = #tpu.pipeline_mode<synchronous>, transform_indices = @transform_4, window_bounds = array<i64: 1, 128>}, {pipeline_mode = #tpu.pipeline_mode<synchronous>, transform_indices = @transform_5, window_bounds = array<i64: 128, 1>}, {pipeline_mode = #tpu.pipeline_mode<synchronous>, transform_indices = @transform_6, window_bounds = array<i64: 1, 1>}, {transform_indices = @transform_7, window_bounds = array<i64: 8, 1>}]} {
    %c0 = arith.constant 0 : index
    %c0_0 = arith.constant 0 : index
    %0 = vector.load %arg1[%c0, %c0_0] : memref<8x32xf32, #tpu.memory_space<vmem>>, vector<8x32xf32>
    %c0_1 = arith.constant 0 : index
    %c0_2 = arith.constant 0 : index
    %1 = vector.load %arg2[%c0_1, %c0_2] : memref<32x128xf32, #tpu.memory_space<vmem>>, vector<32x128xf32>
    %cst = arith.constant dense<0.000000e+00> : vector<8x128xf32>
    %2 = tpu.matmul %0, %1, %cst {dimension_numbers = #tpu.dot_dimension_numbers<[1], [0], [0], [1], [0, 0, 1, 1], [], []>} : vector<8x32xf32>, vector<32x128xf32>, vector<8x128xf32> -> vector<8x128xf32>
    %c0_3 = arith.constant 0 : index
    %c0_4 = arith.constant 0 : index
    %3 = vector.load %arg3[%c0_3, %c0_4] : memref<1x128xf32, #tpu.memory_space<vmem>>, vector<1x128xf32>
    %4 = vector.broadcast %3 : vector<1x128xf32> to vector<8x128xf32>
    %5 = arith.addf %2, %4 : vector<8x128xf32>
    %cst_5 = arith.constant 0.000000e+00 : f32
    %6 = vector.broadcast %cst_5 : f32 to vector<8x128xf32>
    %7 = arith.maximumf %5, %6 : vector<8x128xf32>
    %c0_6 = arith.constant 0 : index
    %c0_7 = arith.constant 0 : index
    %8 = vector.load %arg4[%c0_6, %c0_7] : memref<128x128xf32, #tpu.memory_space<vmem>>, vector<128x128xf32>
    %cst_8 = arith.constant dense<0.000000e+00> : vector<8x128xf32>
    %9 = tpu.matmul %7, %8, %cst_8 {dimension_numbers = #tpu.dot_dimension_numbers<[1], [0], [0], [1], [0, 0, 1, 1], [], []>} : vector<8x128xf32>, vector<128x128xf32>, vector<8x128xf32> -> vector<8x128xf32>
    %c0_9 = arith.constant 0 : index
    %c0_10 = arith.constant 0 : index
    %10 = vector.load %arg5[%c0_9, %c0_10] : memref<1x128xf32, #tpu.memory_space<vmem>>, vector<1x128xf32>
    %11 = vector.broadcast %10 : vector<1x128xf32> to vector<8x128xf32>
    %12 = arith.addf %9, %11 : vector<8x128xf32>
    %cst_11 = arith.constant 0.000000e+00 : f32
    %13 = vector.broadcast %cst_11 : f32 to vector<8x128xf32>
    %14 = arith.maximumf %12, %13 : vector<8x128xf32>
    %c0_12 = arith.constant 0 : index
    %c0_13 = arith.constant 0 : index
    %15 = vector.load %arg6[%c0_12, %c0_13] : memref<128x1xf32, #tpu.memory_space<vmem>>, vector<128x1xf32>
    %cst_14 = arith.constant dense<0.000000e+00> : vector<8x1xf32>
    %16 = tpu.matmul %14, %15, %cst_14 {dimension_numbers = #tpu.dot_dimension_numbers<[1], [0], [0], [1], [0, 0, 1, 1], [], []>} : vector<8x128xf32>, vector<128x1xf32>, vector<8x1xf32> -> vector<8x1xf32>
    %c0_15 = arith.constant 0 : index
    %c0_16 = arith.constant 0 : index
    %17 = vector.load %arg7[%c0_15, %c0_16] : memref<1x1xf32, #tpu.memory_space<vmem>>, vector<1x1xf32>
    %18 = vector.broadcast %17 : vector<1x1xf32> to vector<8x1xf32>
    %19 = arith.addf %16, %18 : vector<8x1xf32>
    %20 = arith.negf %19 : vector<8x1xf32>
    %21 = math.exp %20 : vector<8x1xf32>
    %cst_17 = arith.constant 1.000000e+00 : f32
    %22 = vector.broadcast %cst_17 : f32 to vector<8x1xf32>
    %23 = arith.addf %22, %21 : vector<8x1xf32>
    %24 = arith.divf %22, %23 : vector<8x1xf32>
    %c0_18 = arith.constant 0 : index
    %c0_19 = arith.constant 0 : index
    %25 = vector.load %arg8[%c0_18, %c0_19] : memref<8x1xf32, #tpu.memory_space<vmem>>, vector<8x1xf32>
    tpu.vector_store %arg8[%c0_18, %c0_19], %24 {strides = array<i32>} : memref<8x1xf32, #tpu.memory_space<vmem>>, vector<8x1xf32>,
    return
  }
  func.func @transform_0(%arg0: i32) -> (i32, i32) {
    %c0_i32 = arith.constant 0 : i32
    %c0_i32_0 = arith.constant 0 : i32
    return %arg0, %c0_i32 : i32, i32
  }
  func.func @transform_1(%arg0: i32) -> (i32, i32) {
    %c0_i32 = arith.constant 0 : i32
    %c0_i32_0 = arith.constant 0 : i32
    %c0_i32_1 = arith.constant 0 : i32
    return %c0_i32, %c0_i32_0 : i32, i32
  }
  func.func @transform_2(%arg0: i32) -> (i32, i32) {
    %c0_i32 = arith.constant 0 : i32
    %c0_i32_0 = arith.constant 0 : i32
    %c0_i32_1 = arith.constant 0 : i32
    return %c0_i32, %c0_i32_0 : i32, i32
  }
  func.func @transform_3(%arg0: i32) -> (i32, i32) {
    %c0_i32 = arith.constant 0 : i32
    %c0_i32_0 = arith.constant 0 : i32
    %c0_i32_1 = arith.constant 0 : i32
    return %c0_i32, %c0_i32_0 : i32, i32
  }
  func.func @transform_4(%arg0: i32) -> (i32, i32) {
    %c0_i32 = arith.constant 0 : i32
    %c0_i32_0 = arith.constant 0 : i32
    %c0_i32_1 = arith.constant 0 : i32
    return %c0_i32, %c0_i32_0 : i32, i32
  }
  func.func @transform_5(%arg0: i32) -> (i32, i32) {
    %c0_i32 = arith.constant 0 : i32
    %c0_i32_0 = arith.constant 0 : i32
    %c0_i32_1 = arith.constant 0 : i32
    return %c0_i32, %c0_i32_0 : i32, i32
  }
  func.func @transform_6(%arg0: i32) -> (i32, i32) {
    %c0_i32 = arith.constant 0 : i32
    %c0_i32_0 = arith.constant 0 : i32
    %c0_i32_1 = arith.constant 0 : i32
    return %c0_i32, %c0_i32_0 : i32, i32
  }
  func.func @transform_7(%arg0: i32) -> (i32, i32) {
    %c0_i32 = arith.constant 0 : i32
    %c0_i32_0 = arith.constant 0 : i32
    return %arg0, %c0_i32 : i32, i32
  }
}

</mosaic_0001>

<bundles_post_ra>
// kernel: tpu_custom_call.1
= control target key start
LH: loop header
LB: loop body
LE: loop exit
PB: predicated region body
PF: predicated region fallthrough
CT: control target
= control target key end

     0   :  { %s732_s0 = inlined_call_operand.vmem [shape: f32[8,32], index: 0, kind: input, shape index: {}]   ;;  %s733_s1 = inlined_call_operand.hbm [shape: f32[32,128], index: 1, kind: input, shape index: {}]   ;;  %s734_s2 = inlined_call_operand.vmem [shape: f32[1,128], index: 2, kind: input, shape index: {}]   ;;  %s735_s3 = inlined_call_operand.vmem [shape: f32[128,128], index: 3, kind: input, shape index: {}]   ;;  %s736_s4 = inlined_call_operand.vmem [shape: f32[1,128], index: 4, kind: input, shape index: {}]   ;;  %s737_s5 = inlined_call_operand.vmem [shape: f32[128,1], index: 5, kind: input, shape index: {}]   ;;  %s738_s6 = inlined_call_operand.<no memory space> [shape: f32[1,1], index: 6, kind: input, shape index: {}]   ;;  %s739_s7 = inlined_call_operand.vmem [shape: f32[8,1], index: 7, kind: output, shape index: {}]  }
   0x1   :  { %v12_v0 = vstv %s738_s6 }
   0x2   :  { %13 = vst [vmem:[#allocation2] sm:$0x1] %v12_v0 }
   0x3   :  { %14 = vsyncpa [#allocation4], 0  ;;  %s542_s26 = smov [#allocation3]   ;;  %s518_s30 = scalar_lea.hbm %s733_s1, 512 }
   0x4   :  { %s22_s27 = sshll.u32 %s542_s26, 4  ;;  %p519_p0 = scmp.ne.s32.totalorder %s733_s1, %s518_s30  ;;  %s23_s27 = int_to_ptr.vmem [resolvable:$true] %s22_s27 }
   0x5   :  { %p522_p1 = scmp.lt.u32.totalorder %s518_s30, %s733_s1 }
   0x7   :  { %p524_p2 = pnand %p522_p1, %p519_p0 }
   0x9   :  { %527 = shalt.err (!%p524_p2)
}
   0xa   :  { %s528_s6 = scalar_lea.vmem %s23_s27, 512  ;;  %p533_p4 = scmp.lt.s32.totalorder %s23_s27, %s23_s27 }
   0xb   :  { %p529_p3 = scmp.ne.s32.totalorder %s23_s27, %s528_s6  ;;  %p534_p5 = scmp.lt.s32.totalorder %s528_s6, %s528_s6 }
   0xd   :  { %p535_p6 = por %p534_p5, %p533_p4 }
   0xf   :  { %p536_p7 = pnand %p535_p6, %p529_p3 }
  0x11   :  { %539 = shalt.err (!%p536_p7)
}
  0x12   :  { %s543_s12 = smov 128   ;;  %s544_s13 = smov 8  }
  0x13   :  { %28 = dma.hbm_to_vmem [thread:$0]  %s733_s1, 512, %s23_s27, [#allocation4], %s543_s12, %s543_s12, %s544_s13  }
  0x14   :  { %540 = dma.done.wait [#allocation4], 512  }
  0x15   :  { %541 = vsyncadd [#allocation4], 4294966784  ;;  %v545_v1 = vmov 0.0|0.0   ;;  %vm546_vm0 = vmmov 0   ;;  %v547_v2 = vmov 0.0   ;;  %v43_v3 = vld [vmem:[#allocation3] sm:$0xff] }
  0x16   :  { %454 = vmatprep.subr.bf16.mxu0 %v545_v1  ;;  %381 = vmatprep.mubr.msk.f32.mxu0 %vm546_vm0, %v547_v2  ;;  %v44_v4 = vld [vmem:[#allocation3 + $0x8] sm:$0xff]  ;;  %v45_v5 = vld [vmem:[#allocation3 + $0x10] sm:$0xff]  ;;  %v46_v7 = vld [vmem:[#allocation3 + $0x18] sm:$0xff]  ;;  %vm54_vm1 = vcmask 261120   ;;  %vm322_vm2 = vcmask 7168  }
  0x17   :  { %460 = vmatprep.subr.bf16.mxu1 %v545_v1  ;;  %416 = vmatprep.mubr.msk.f32.mxu1 %vm546_vm0, %v547_v2  ;;  %v455_v6 = vpack.c.bf16 %v44_v4, %v43_v3  ;;  %v129_v8 = vld [vmem:[%s735_s3] sm:$0xff]  ;;  %v130_v9 = vld [vmem:[%s735_s3 + $0x8] sm:$0xff]  ;;  %v131_v10 = vld [vmem:[%s735_s3 + $0x10] sm:$0xff]  ;;  %v458_v12 = vpack.c.bf16 %v46_v7, %v45_v5 }
  0x18   :  { %v132_v11 = vld [vmem:[%s735_s3 + $0x18] sm:$0xff]  ;;  %v461_v13 = vpack.c.bf16 %v130_v9, %v129_v8  ;;  %v133_v15 = vld [vmem:[%s735_s3 + $0x20] sm:$0xff]  ;;  %v134_v16 = vld [vmem:[%s735_s3 + $0x28] sm:$0xff] }
  0x19   :  { %456 = vmatpush3.bf16.msra.mxu0 %v455_v6  ;;  %v464_v14 = vpack.c.bf16 %v132_v11, %v131_v10  ;;  %v42_v17 = vld [vmem:[%s732_s0] sm:$0xff]  ;;  %v467_v18 = vpack.c.bf16 %v134_v16, %v133_v15  ;;  %v135_v19 = vld [vmem:[%s735_s3 + $0x30] sm:$0xff]  ;;  %v136_v20 = vld [vmem:[%s735_s3 + $0x38] sm:$0xff] }
  0x1a   :  { %457 = vmatprep.subr.bf16.mxu0 %v545_v1  ;;  %462 = vmatpush3.bf16.msra.mxu1 %v461_v13  ;;  %v470_v21 = vpack.c.bf16 %v136_v20, %v135_v19  ;;  %v137_v22 = vld [vmem:[%s735_s3 + $0x40] sm:$0xff]  ;;  %v138_v23 = vld [vmem:[%s735_s3 + $0x48] sm:$0xff]  ;;  %v139_v25 = vld [vmem:[%s735_s3 + $0x50] sm:$0xff] }
  0x1b   :  { %463 = vmatprep.subr.bf16.mxu1 %v545_v1  ;;  %v473_v24 = vpack.c.bf16 %v138_v23, %v137_v22  ;;  %v140_v26 = vld [vmem:[%s735_s3 + $0x58] sm:$0xff]  ;;  %v141_v28 = vld [vmem:[%s735_s3 + $0x60] sm:$0xff]  ;;  %v142_v29 = vld [vmem:[%s735_s3 + $0x68] sm:$0xff] }
  0x1c   :  { %v476_v27 = vpack.c.bf16 %v140_v26, %v139_v25  ;;  %v479_v30 = vpack.c.bf16 %v142_v29, %v141_v28  ;;  %v143_v31 = vld [vmem:[%s735_s3 + $0x70] sm:$0xff]  ;;  %v144_v32 = vld [vmem:[%s735_s3 + $0x78] sm:$0xff]  ;;  %v223_v34 = vld [vmem:[%s737_s5] sm:$0xff] }
  0x1d   :  { %459 = vmatpush3.bf16.msra.mxu0 %v458_v12  ;;  %v482_v33 = vpack.c.bf16 %v144_v32, %v143_v31  ;;  %v224_v35 = vld [vmem:[%s737_s5 + $0x8] sm:$0xff]  ;;  %v225_v36 = vld [vmem:[%s737_s5 + $0x10] sm:$0xff]  ;;  %v226_v38 = vld [vmem:[%s737_s5 + $0x18] sm:$0xff] }
  0x1e   :  { %484 = vmatprep.subr.bf16.mxu0 %v545_v1  ;;  %465 = vmatpush3.bf16.msra.mxu1 %v464_v14  ;;  %v485_v37 = vpack.c.bf16 %v224_v35, %v223_v34  ;;  %v488_v39 = vpack.c.bf16 %v226_v38, %v225_v36  ;;  %v227_v40 = vld [vmem:[%s737_s5 + $0x20] sm:$0xff]  ;;  %v228_v41 = vld [vmem:[%s737_s5 + $0x28] sm:$0xff]  ;;  %v229_v43 = vld [vmem:[%s737_s5 + $0x30] sm:$0xff] }
  0x1f   :  { %466 = vmatprep.subr.bf16.mxu1 %v545_v1  ;;  %v491_v42 = vpack.c.bf16 %v228_v41, %v227_v40  ;;  %v230_v44 = vld [vmem:[%s737_s5 + $0x38] sm:$0xff]  ;;  %v231_v46 = vld [vmem:[%s737_s5 + $0x40] sm:$0xff]  ;;  %v232_v47 = vld [vmem:[%s737_s5 + $0x48] sm:$0xff] }
  0x20   :  { %382 = vmatmul.mubr.msk.f32.vlgmr.msra.gmra.mrb[0].mxu0 %vm54_vm1, %v42_v17  ;;  %v494_v45 = vpack.c.bf16 %v230_v44, %v229_v43  ;;  %v497_v48 = vpack.c.bf16 %v232_v47, %v231_v46  ;;  %v233_v49 = vld [vmem:[%s737_s5 + $0x50] sm:$0xff]  ;;  %v234_v50 = vld [vmem:[%s737_s5 + $0x58] sm:$0xff]  ;;  %v235_v52 = vld [vmem:[%s737_s5 + $0x60] sm:$0xff] }
  0x21   :  { %451 = vmatprep.mubr.msk.f32.mxu0 %vm546_vm0, %v547_v2  ;;  %486 = vmatpush3.bf16.msra.mxu0 %v485_v37  ;;  %v500_v51 = vpack.c.bf16 %v234_v50, %v233_v49  ;;  %v236_v53 = vld [vmem:[%s737_s5 + $0x68] sm:$0xff]  ;;  %v329_v55 = vld [vmem:[%s734_s2] ss:$0 sm:$0xff]  ;;  %v237_v60 = vld [vmem:[%s737_s5 + $0x70] sm:$0xff] }
  0x22   :  { %468 = vmatpush3.bf16.msra.mxu1 %v467_v18  ;;  %487 = vmatprep.subr.bf16.mxu0 %v545_v1  ;;  %v503_v54 = vpack.c.bf16 %v236_v53, %v235_v52  ;;  %v238_v61 = vld [vmem:[%s737_s5 + $0x78] sm:$0xff]  ;;  %v331_v63 = vld [vmem:[%s736_s4] ss:$0 sm:$0xff] }
  0x23   :  { %469 = vmatprep.subr.bf16.mxu1 %v545_v1  ;;  %v506_v62 = vpack.c.bf16 %v238_v61, %v237_v60  ;;  %v332_v4 = vld [vmem:[#allocation2] ss:$0 sm:$0xff] }
  0x25   :  { %489 = vmatpush3.bf16.msra.mxu0 %v488_v39 }
  0x26   :  { %471 = vmatpush3.bf16.msra.mxu1 %v470_v21  ;;  %490 = vmatprep.subr.bf16.mxu0 %v545_v1 }
  0x27   :  { %472 = vmatprep.subr.bf16.mxu1 %v545_v1 }
  0x29   :  { %492 = vmatpush3.bf16.msra.mxu0 %v491_v42 }
  0x2a   :  { %474 = vmatpush3.bf16.msra.mxu1 %v473_v24  ;;  %493 = vmatprep.subr.bf16.mxu0 %v545_v1 }
  0x2b   :  { %475 = vmatprep.subr.bf16.mxu1 %v545_v1 }
  0x2d   :  { %495 = vmatpush3.bf16.msra.mxu0 %v494_v45 }
  0x2e   :  { %477 = vmatpush3.bf16.msra.mxu1 %v476_v27  ;;  %496 = vmatprep.subr.bf16.mxu0 %v545_v1 }
  0x2f   :  { %478 = vmatprep.subr.bf16.mxu1 %v545_v1 }
  0x31   :  { %498 = vmatpush3.bf16.msra.mxu0 %v497_v48 }
  0x32   :  { %480 = vmatpush3.bf16.msra.mxu1 %v479_v30  ;;  %499 = vmatprep.subr.bf16.mxu0 %v545_v1 }
  0x33   :  { %481 = vmatprep.subr.bf16.mxu1 %v545_v1 }
  0x35   :  { %501 = vmatpush3.bf16.msra.mxu0 %v500_v51 }
  0x36   :  { %483 = vmatpush3.bf16.msra.mxu1 %v482_v33  ;;  %502 = vmatprep.subr.bf16.mxu0 %v545_v1 }
  0x39   :  { %504 = vmatpush3.bf16.msra.mxu0 %v503_v54 }
  0x3a   :  { %505 = vmatprep.subr.bf16.mxu0 %v545_v1 }
  0x3d   :  { %507 = vmatpush3.bf16.msra.mxu0 %v506_v62 }
  0xf3   :  { %v124_v56 = vpop.f32.mrb[0].mxu0 }
  0xf4   :  { %v125_v57 = vadd.f32 %v329_v55, %v124_v56  ;;  %v383_v58 = vpop.f32.mrb[1].mxu0 }
  0xf6   :  { %v128_v59 = vmax.f32 %v125_v57, 0.0 }
  0xf8   :  { %417 = vmatmul.mubr.f32.vlgmr.msra.gmra.mrb[0].mxu1 %v128_v59 }
 0x1cb   :  { %v218_v0 = vpop.f32.mrb[0].mxu1 }
 0x1cc   :  { %v219_v1 = vadd.f32 %v331_v63, %v218_v0  ;;  %v418_v2 = vpop.f32.mrb[1].mxu1 }
 0x1ce   :  { %v222_v3 = vmax.f32 %v219_v1, 0.0 }
 0x1d0   :  { %452 = vmatmul.mubr.f32.vlgmr.msra.gmra.mrb[2].mxu0 %v222_v3 }
 0x2a3   :  { %v312_v5 = vpop.f32.mrb[2].mxu0 }
 0x2a4   :  { %v313_v6 = vadd.f32 %v332_v4, %v312_v5  ;;  %v453_v7 = vpop.f32.mrb[3].mxu0 }
 0x2a6   :  { %v333_v8 = vmul.f32 -1.442695, %v313_v6 }
 0x2a8   :  { %514 = vpow2.f32 %v333_v8 }
 0x2b2   :  { %v515_v9 = vpop.eup %514 }
 0x2b3   :  { %v319_v10 = vadd.f32 1.0, %v515_v9 }
 0x2b5   :  { %516 = vrcp.f32 %v319_v10 }
 0x2bf   :  { %v517_v11 = vpop.eup %516 }
 0x2c0   :  { %323 = vst.msk [vmem:[%s739_s7] sm:$0xff] %vm322_vm2, %v517_v11 }
 0x2c1   :  { %328 = vsyncpa [#allocation4], 1 }

</bundles_post_ra>
